<compile_context>
chip_gen: v6e
topology: v6e:2x2x1
jax: 0.10.0
libtpu: 0.0.40
codegen_flags: <defaults>
</compile_context>

<pallas_src>
import functools

import jax
import jax.numpy as jnp
from jax.experimental import pallas as pl
from jax.experimental.pallas import tpu as pltpu


def cos_distance_kernel(q_ref, s_ref, lab_ref, o_ref, *, T, D):
    # q_ref  : (1, Q, T*D) f32  queries for this episode, time folded into lanes
    # s_ref  : (1, S, T*D) f32  supports for this episode
    # lab_ref: (1, S, 1)   i32  support class labels in [0, way)
    # o_ref  : (1, Q, W)   f32  logits = -mean per-class euclidean distance
    TD = T * D
    S = s_ref.shape[1]
    W = o_ref.shape[2]

    q2 = q_ref[0].astype(jnp.float32)          # (Q, TD)
    s2 = s_ref[0].astype(jnp.float32)          # (S, TD)
    labels = lab_ref[0]                        # (S, 1) i32

    # ---- Fused time-mean on the MXU (lane-dense loads, K = T*D) ----------
    # selector[r, c] = 1/T if (r mod D) == c else 0   -> x2 @ sel == mean_t x
    row = jax.lax.broadcasted_iota(jnp.int32, (TD, D), 0)
    col = jax.lax.broadcasted_iota(jnp.int32, (TD, D), 1)
    if D & (D - 1) == 0:                       # power-of-two D: cheap AND-mod
        row_mod = jnp.bitwise_and(row, D - 1)
    else:
        row_mod = row % D
    sel = jnp.where(row_mod == col, jnp.float32(1.0 / T), jnp.float32(0.0))

    q = jax.lax.dot_general(q2, sel, (((1,), (0,)), ((), ())),
                            preferred_element_type=jnp.float32)      # (Q, D)
    s = jax.lax.dot_general(s2, sel, (((1,), (0,)), ((), ())),       # (S, D)
                            preferred_element_type=jnp.float32)

    # ---- Pairwise squared Euclidean distances via the matmul identity ----
    qn = jnp.sum(q * q, axis=-1, keepdims=True)                      # (Q, 1)
    sn_row = jax.lax.dot_general(                                    # (1, S)
        jnp.ones((1, D), jnp.float32), s * s,
        dimension_numbers=(((1,), (1,)), ((), ())),
        preferred_element_type=jnp.float32)
    cross = jax.lax.dot_general(                                     # (Q, S)
        q, s, dimension_numbers=(((1,), (1,)), ((), ())),
        preferred_element_type=jnp.float32)
    sq = jnp.maximum(qn + sn_row - 2.0 * cross, 0.0)
    dist = jnp.sqrt(sq)                                              # (Q, S)

    # ---- In-kernel one-hot membership + per-class counts ------------------
    class_ids = jax.lax.broadcasted_iota(jnp.int32, (S, W), 1)       # (S, W)
    oh = (labels == class_ids).astype(jnp.float32)                   # (S, W)
    counts = jnp.sum(oh, axis=0, keepdims=True)                      # (1, W)

    # Per-class mean distance: dist @ one_hot, scale by 1/count, negate.
    sums = jnp.dot(dist, oh, preferred_element_type=jnp.float32)     # (Q, W)
    inv_counts = pl.reciprocal(jnp.maximum(counts, 1.0), approx=True)
    o_ref[0] = -(sums * inv_counts)


@functools.partial(jax.jit, static_argnames=("way",))
def cos_distance_forward_batched(support_sets, support_labels, queries, way):
    """Batched CosDistance.forward over B independent episodes.

    support_sets  : (B, S, T, D) float
    support_labels: (B, S)       int, values in [0, way)
    queries       : (B, Q, T, D) float
    returns       : (B, Q, way)  float32 logits
    """
    B, Q, T, D = queries.shape
    S = support_sets.shape[1]

    # Contiguous reshapes (no copy): fold time into the lane dimension.
    q3 = queries.reshape(B, Q, T * D).astype(jnp.float32)
    s3 = support_sets.reshape(B, S, T * D).astype(jnp.float32)
    labels = support_labels.astype(jnp.int32).reshape(B, S, 1)

    kernel = functools.partial(cos_distance_kernel, T=T, D=D)
    return pl.pallas_call(
        kernel,
        out_shape=jax.ShapeDtypeStruct((B, Q, way), jnp.float32),
        grid_spec=pl.GridSpec(
            grid=(B,),
            in_specs=[
                pl.BlockSpec((1, Q, T * D), lambda b: (b, 0, 0)),
                pl.BlockSpec((1, S, T * D), lambda b: (b, 0, 0)),
                pl.BlockSpec((1, S, 1), lambda b: (b, 0, 0)),
            ],
            out_specs=pl.BlockSpec((1, Q, way), lambda b: (b, 0, 0)),
        ),
        compiler_params=pltpu.CompilerParams(
            dimension_semantics=("parallel",)),
    )(q3, s3, labels)


def cos_distance_forward(support_set, support_labels, queries, way):
    """Single-episode API matching the PyTorch module's forward signature."""
    out = cos_distance_forward_batched(
        support_set[None], support_labels[None], queries[None], way=way)
    return out[0]


if __name__ == "__main__":
    # Few-shot setup consistent with the module: `way` classes, `shot`
    # supports per class, each sample is a (T, D) sequence; B episodes are
    # batched into one pallas_call (the main perf lever at this size).
    way, shot, T, D, n_queries, B = 5, 5, 8, 32, 4, 4
    S = way * shot
    key = jax.random.PRNGKey(0)
    k1, k2, k3 = jax.random.split(key, 3)
    support_sets = jax.random.normal(k1, (B, S, T, D), dtype=jnp.float32)
    queries = jax.random.normal(k2, (B, n_queries, T, D), dtype=jnp.float32)
    base = jnp.repeat(jnp.arange(way, dtype=jnp.int32), shot)
    support_labels = jnp.stack(
        [jax.random.permutation(jax.random.fold_in(k3, b), base)
         for b in range(B)])

    logits = cos_distance_forward_batched(
        support_sets, support_labels, queries, way=way)
    logits = jax.block_until_ready(logits)

    # Pure-JAX reference mirroring the PyTorch forward (per-class cdist mean).
    def ref_episode(sup, lab, qry):
        qm = qry.mean(axis=1)
        sm = sup.mean(axis=1)
        out = jnp.zeros((qry.shape[0], way), jnp.float32)
        for c in range(way):
            cls = sm[lab == c]
            dm = jnp.sqrt(
                jnp.sum((qm[:, None, :] - cls[None, :, :]) ** 2, axis=-1))
            out = out.at[:, c].set(-dm.mean(axis=1))
        return out

    ref = jnp.stack([ref_episode(support_sets[b], support_labels[b], queries[b])
                     for b in range(B)])

    assert logits.shape == (B, n_queries, way)
    # Tolerance leaves headroom for the EUP approx reciprocal (~2^-12 rel).
    assert jnp.allclose(logits, ref, atol=2e-3, rtol=2e-3), (logits, ref)

    # Single-episode path (the module's own signature) must agree too.
    single = cos_distance_forward(
        support_sets[0], support_labels[0], queries[0], way=way)
    single = jax.block_until_ready(single)
    assert single.shape == (n_queries, way)
    assert jnp.allclose(single, ref[0], atol=2e-3, rtol=2e-3), (single, ref[0])

    print("KERNEL_OK")
</pallas_src>

<mosaic_0001>
module attributes {stable_mosaic.version = 11 : i64} {
  func.func @cos_distance_kernel(%arg0: i32, %arg1: memref<1x4x256xf32, #tpu.memory_space<vmem>>, %arg2: memref<1x25x256xf32, #tpu.memory_space<vmem>>, %arg3: memref<1x25x1xi32, #tpu.memory_space<vmem>>, %arg4: memref<1x4x5xf32, #tpu.memory_space<vmem>>) attributes {dimension_semantics = [#tpu.dimension_semantics<parallel>], iteration_bounds = array<i64: 4>, scalar_prefetch = 0 : i64, scratch_operands = 0 : i64, tpu.core_type = #tpu.core_type<tc>, window_params = [{transform_indices = @transform_0, window_bounds = array<i64: 1, 4, 256>}, {transform_indices = @transform_1, window_bounds = array<i64: 1, 25, 256>}, {transform_indices = @transform_2, window_bounds = array<i64: 1, 25, 1>}, {transform_indices = @transform_3, window_bounds = array<i64: 1, 4, 5>}]} {
    %c0 = arith.constant 0 : index
    %c0_0 = arith.constant 0 : index
    %c0_1 = arith.constant 0 : index
    %0 = vector.load %arg1[%c0, %c0_0, %c0_1] : memref<1x4x256xf32, #tpu.memory_space<vmem>>, vector<1x4x256xf32>
    %1 = vector.shape_cast %0 : vector<1x4x256xf32> to vector<4x256xf32>
    %c0_2 = arith.constant 0 : index
    %c0_3 = arith.constant 0 : index
    %c0_4 = arith.constant 0 : index
    %2 = vector.load %arg2[%c0_2, %c0_3, %c0_4] : memref<1x25x256xf32, #tpu.memory_space<vmem>>, vector<1x25x256xf32>
    %3 = vector.shape_cast %2 : vector<1x25x256xf32> to vector<25x256xf32>
    %c0_5 = arith.constant 0 : index
    %c0_6 = arith.constant 0 : index
    %c0_7 = arith.constant 0 : index
    %4 = vector.load %arg3[%c0_5, %c0_6, %c0_7] : memref<1x25x1xi32, #tpu.memory_space<vmem>>, vector<1x25x1xi32>
    %5 = vector.shape_cast %4 : vector<1x25x1xi32> to vector<25x1xi32>
    %6 = tpu.iota {dimensions = array<i32: 0>} : vector<256x32xi32>
    %7 = tpu.iota {dimensions = array<i32: 1>} : vector<256x32xi32>
    %c31_i32 = arith.constant 31 : i32
    %8 = vector.broadcast %c31_i32 : i32 to vector<256x32xi32>
    %9 = arith.andi %6, %8 : vector<256x32xi32>
    %10 = arith.cmpi eq, %9, %7 : vector<256x32xi32>
    %cst = arith.constant 1.250000e-01 : f32
    %cst_8 = arith.constant 0.000000e+00 : f32
    %11 = vector.broadcast %cst : f32 to vector<256x32xf32>
    %12 = vector.broadcast %cst_8 : f32 to vector<256x32xf32>
    %13 = arith.select %10, %11, %12 : vector<256x32xi1>, vector<256x32xf32>
    %cst_9 = arith.constant dense<0.000000e+00> : vector<4x32xf32>
    %14 = tpu.matmul %1, %13, %cst_9 {dimension_numbers = #tpu.dot_dimension_numbers<[1], [0], [0], [1], [0, 0, 1, 1], [], []>} : vector<4x256xf32>, vector<256x32xf32>, vector<4x32xf32> -> vector<4x32xf32>
    %cst_10 = arith.constant dense<0.000000e+00> : vector<25x32xf32>
    %15 = tpu.matmul %3, %13, %cst_10 {dimension_numbers = #tpu.dot_dimension_numbers<[1], [0], [0], [1], [0, 0, 1, 1], [], []>} : vector<25x256xf32>, vector<256x32xf32>, vector<25x32xf32> -> vector<25x32xf32>
    %16 = arith.mulf %14, %14 : vector<4x32xf32>
    %cst_11 = arith.constant dense<0.000000e+00> : vector<4xf32>
    %17 = vector.multi_reduction <add>, %16, %cst_11 [1] : vector<4x32xf32> to vector<4xf32>
    %18 = vector.shape_cast %17 : vector<4xf32> to vector<4x1xf32>
    %cst_12 = arith.constant 1.000000e+00 : f32
    %19 = vector.broadcast %cst_12 : f32 to vector<1x32xf32>
    %20 = arith.mulf %15, %15 : vector<25x32xf32>
    %cst_13 = arith.constant dense<0.000000e+00> : vector<1x25xf32>
    %21 = tpu.matmul %19, %20, %cst_13 {dimension_numbers = #tpu.dot_dimension_numbers<[1], [1], [0], [0], [0, 0, 1, 0], [], []>} : vector<1x32xf32>, vector<25x32xf32>, vector<1x25xf32> -> vector<1x25xf32>
    %cst_14 = arith.constant dense<0.000000e+00> : vector<4x25xf32>
    %22 = tpu.matmul %14, %15, %cst_14 {dimension_numbers = #tpu.dot_dimension_numbers<[1], [1], [0], [0], [0, 0, 1, 0], [], []>} : vector<4x32xf32>, vector<25x32xf32>, vector<4x25xf32> -> vector<4x25xf32>
    %23 = vector.broadcast %18 : vector<4x1xf32> to vector<4x25xf32>
    %24 = vector.broadcast %21 : vector<1x25xf32> to vector<4x25xf32>
    %25 = arith.addf %23, %24 : vector<4x25xf32>
    %cst_15 = arith.constant 2.000000e+00 : f32
    %26 = vector.broadcast %cst_15 : f32 to vector<4x25xf32>
    %27 = arith.mulf %26, %22 : vector<4x25xf32>
    %28 = arith.subf %25, %27 : vector<4x25xf32>
    %cst_16 = arith.constant 0.000000e+00 : f32
    %29 = vector.broadcast %cst_16 : f32 to vector<4x25xf32>
    %30 = arith.maximumf %28, %29 : vector<4x25xf32>
    %31 = math.sqrt %30 : vector<4x25xf32>
    %32 = tpu.iota {dimensions = array<i32: 1>} : vector<25x5xi32>
    %33 = vector.broadcast %5 : vector<25x1xi32> to vector<25x5xi32>
    %34 = arith.cmpi eq, %33, %32 : vector<25x5xi32>
    %35 = arith.extui %34 : vector<25x5xi1> to vector<25x5xi32>
    %36 = arith.sitofp %35 : vector<25x5xi32> to vector<25x5xf32>
    %cst_17 = arith.constant dense<0.000000e+00> : vector<5xf32>
    %37 = vector.multi_reduction <add>, %36, %cst_17 [0] : vector<25x5xf32> to vector<5xf32>
    %38 = vector.shape_cast %37 : vector<5xf32> to vector<1x5xf32>
    %cst_18 = arith.constant dense<0.000000e+00> : vector<4x5xf32>
    %39 = tpu.matmul %31, %36, %cst_18 {dimension_numbers = #tpu.dot_dimension_numbers<[1], [0], [0], [1], [0, 0, 1, 1], [], []>} : vector<4x25xf32>, vector<25x5xf32>, vector<4x5xf32> -> vector<4x5xf32>
    %cst_19 = arith.constant 1.000000e+00 : f32
    %40 = vector.broadcast %cst_19 : f32 to vector<1x5xf32>
    %41 = arith.maximumf %38, %40 : vector<1x5xf32>
    %42 = tpu.reciprocal %41 {approx = true} : vector<1x5xf32> -> vector<1x5xf32>
    %43 = vector.broadcast %42 : vector<1x5xf32> to vector<4x5xf32>
    %44 = arith.mulf %39, %43 : vector<4x5xf32>
    %cst_20 = arith.constant 0.000000e+00 : f32
    %45 = vector.broadcast %cst_20 : f32 to vector<4x5xf32>
    %46 = arith.subf %45, %44 : vector<4x5xf32>
    %c0_21 = arith.constant 0 : index
    %c0_22 = arith.constant 0 : index
    %c0_23 = arith.constant 0 : index
    %47 = vector.load %arg4[%c0_21, %c0_22, %c0_23] : memref<1x4x5xf32, #tpu.memory_space<vmem>>, vector<1x4x5xf32>
    %48 = vector.shape_cast %47 : vector<1x4x5xf32> to vector<4x5xf32>
    %49 = vector.shape_cast %46 : vector<4x5xf32> to vector<1x4x5xf32>
    tpu.vector_store %arg4[%c0_21, %c0_22, %c0_23], %49 {strides = array<i32>} : memref<1x4x5xf32, #tpu.memory_space<vmem>>, vector<1x4x5xf32>,
    return
  }
  func.func @transform_0(%arg0: i32) -> (i32, i32, i32) {
    %c0_i32 = arith.constant 0 : i32
    %c0_i32_0 = arith.constant 0 : i32
    %c0_i32_1 = arith.constant 0 : i32
    return %arg0, %c0_i32, %c0_i32_0 : i32, i32, i32
  }
  func.func @transform_1(%arg0: i32) -> (i32, i32, i32) {
    %c0_i32 = arith.constant 0 : i32
    %c0_i32_0 = arith.constant 0 : i32
    %c0_i32_1 = arith.constant 0 : i32
    return %arg0, %c0_i32, %c0_i32_0 : i32, i32, i32
  }
  func.func @transform_2(%arg0: i32) -> (i32, i32, i32) {
    %c0_i32 = arith.constant 0 : i32
    %c0_i32_0 = arith.constant 0 : i32
    %c0_i32_1 = arith.constant 0 : i32
    return %arg0, %c0_i32, %c0_i32_0 : i32, i32, i32
  }
  func.func @transform_3(%arg0: i32) -> (i32, i32, i32) {
    %c0_i32 = arith.constant 0 : i32
    %c0_i32_0 = arith.constant 0 : i32
    %c0_i32_1 = arith.constant 0 : i32
    return %arg0, %c0_i32, %c0_i32_0 : i32, i32, i32
  }
}

</mosaic_0001>

<bundles_post_ra>
// kernel: cos_distance_forward_batched.1
= control target key start
LH: loop header
LB: loop body
LE: loop exit
PB: predicated region body
PF: predicated region fallthrough
CT: control target
= control target key end

     0   :  { %8 = vsyncpa [#allocation3], 0  ;;  %s1832_s0 = inlined_call_operand.vmem [shape: f32[4,4,256], index: 0, kind: input, shape index: {}]   ;;  %s1833_s1 = inlined_call_operand.vmem [shape: f32[4,25,256], index: 1, kind: input, shape index: {}]   ;;  %s1834_s2 = inlined_call_operand.vmem [shape: s32[4,25,1], index: 2, kind: input, shape index: {}]   ;;  %s1835_s3 = inlined_call_operand.hbm [shape: f32[4,4,5], index: 3, kind: output, shape index: {}]  }
   0x1   :  { %10 = vsyncpa [#allocation3 + $0x1], 0  ;;  %s1293_s12 = smov 0   ;;  %s1295_s13 = smov 0  }
   0x2   :  { %s1297_s14 = smov 0   ;;  %s1299_s15 = smov 0  }
   0x3 LB: > { %s1314_s16 = sadd.s32 4294967295, %s1265_s15   ;;  %s926_s17 = sadd.s32 4294967294, %s1265_s15   ;;  %s1265_s15 = sphi %s1299_s15, %s1903_s15   ;;  %s1261_s14 = sphi %s1297_s14, %s1902_s14   ;;  %s1257_s13 = sphi %s1295_s13, %s1901_s13   ;;  %s1253_s12 = sphi %s1293_s12, %s1900_s12  }
   0x4   : > { %s1318_s18 = sadd.s32 1, %s1265_s15   ;;  %s101_s19 = sadd.s32 1, %s1261_s14 }
   0x5   : > { %s98_s20 = ssub.s32 %s1265_s15, %s1318_s18  ;;  %p111_p0 = scmp.ne.s32.totalorder %s1261_s14, %s1257_s13 }
   0x6   : > { %p99_p1 = scmp.eq.s32.totalorder %s98_s20, 0  ;;  %p112_p2 = scmp.eq.s32.totalorder %s1314_s16, 3 }
   0x7   : > { %p117_p3 = scmp.ne.s32.totalorder %s1257_s13, %s1253_s12  ;;  %p118_p4 = scmp.eq.s32.totalorder %s926_s17, 3 }
   0x8   : > { %s1329_s21 = scalar_select %p99_p1, %s1261_s14, %s101_s19  }
   0x9   : > { %p1331_p5 = por %p112_p2, %p111_p0  ;;  %p1335_p6 = por %p118_p4, %p117_p3 }
   0xa   : > { %p929_p7 = scmp.ge.s32.totalorder %s1265_s15, 1  ;;  %p160_p8 = scmp.lt.s32.totalorder %s1265_s15, 5 }
   0xc   : > { %p161_p9 = pnand %p929_p7, %p160_p8 }
   0xd   : > { %p194_p10 = scmp.lt.s32.totalorder (!%p161_p9), %s1314_s16, 3  ;;  %s191_s10 = sand.u32 (!%p161_p9), 1, %s1257_s13  }
   0xe   : > { %164 = sbr.rel (%p161_p9) target bundleno = 715 (0x2cb), region = 32  ;;  %s930_s11 = sshll.u32 (!%p161_p9), %s191_s10, 2 }
   0xf   : > { %s1021_s17 = sshll.u32 (!%p161_p9), %s1314_s16, 6  ;;  %s193_s19 = scalar_lea.vmem (!%p161_p9), [#allocation2], %s930_s11 }
  0x10   : > { %s843_s20 = sshll.u32 (!%p161_p9), %s193_s19, 4  ;;  %s841_s26 = scalar_lea.hbm (!%p161_p9), %s1835_s3, %s1021_s17  ;;  %s844_s20 = int_to_ptr.vmem [resolvable:$true] %s843_s20 }
  0x11   : > { %s830_s27 = scalar_lea.sflag (!%p161_p9), [#allocation3], %s191_s10 }
  0x13   : > { %v222_v0 = vlaneseq  ;;  %s1345_s24 = scalar_select %p194_p10, %s1314_s16, 3  ;;  %v1267_v21 = vmov 0.125  }
  0x15   : > { %v1342_v1 = vshrl.u32 %v222_v0, 7  ;;  %v1347_v2 = vand.u32 127, %v222_v0  ;;  %s1025_s25 = sshll.u32 %s1345_s24, 6  ;;  %s1024_s29 = sshll.u32 %s1345_s24, 3 }
  0x16   : > { %s1361_s28 = scalar_lea.vmem %s1833_s1, %s1025_s25  ;;  %s198_s5 = scalar_lea.vmem %s1832_s0, %s1024_s29 }
  0x17   : > { %v254_v3 = vadd.s32 248, %v1342_v1  ;;  %v238_v4 = vadd.s32 120, %v1342_v1  ;;  %v253_v5 = vadd.s32 240, %v1342_v1  ;;  %v237_v6 = vadd.s32 112, %v1342_v1  ;;  %v211_v15 = vld [vmem:[%s1361_s28 + $0x8] sm:$0xff]  ;;  %v209_v37 = vld [vmem:[%s198_s5] sm:$0xff] }
  0x18   : > { %v252_v7 = vadd.s32 232, %v1342_v1  ;;  %v236_v8 = vadd.s32 104, %v1342_v1  ;;  %v251_v9 = vadd.s32 224, %v1342_v1  ;;  %v235_v10 = vadd.s32 96, %v1342_v1  ;;  %490 = vmatprep.mubr.f32.mxu1 %v211_v15  ;;  %v213_v40 = vld [vmem:[%s1361_s28 + $0x18] sm:$0xff]  ;;  %v212_v42 = vld [vmem:[%s1361_s28 + $0x10] sm:$0xff] }
  0x19   : > { %v288_v11 = vand.u32 31, %v254_v3  ;;  %v272_v12 = vand.u32 31, %v238_v4  ;;  %v287_v13 = vand.u32 31, %v253_v5  ;;  %v271_v14 = vand.u32 31, %v237_v6  ;;  %v217_v45 = vld [vmem:[%s1361_s28 + $0x38] sm:$0x1] }
  0x1a   : > { %v286_v16 = vand.u32 31, %v252_v7  ;;  %v270_v17 = vand.u32 31, %v236_v8  ;;  %v285_v20 = vand.u32 31, %v251_v9  ;;  %v269_v24 = vand.u32 31, %v235_v10  ;;  %s1026_s6 = sshll.u32 %s1345_s24, 5  ;;  %s1272_s29 = smov [#allocation2]  }
  0x1b   : > { %vm320_vm0 = vcmp.eq.s32.totalorder %v288_v11, %v1347_v2  ;;  %vm1366_vm1 = vcmp.eq.s32.totalorder %v272_v12, %v1347_v2  ;;  %vm1371_vm2 = vcmp.eq.s32.totalorder %v287_v13, %v1347_v2  ;;  %vm1377_vm3 = vcmp.eq.s32.totalorder %v271_v14, %v1347_v2  ;;  %s1753_s9 = scalar_lea.vmem %s1834_s2, %s1026_s6  ;;  %s1209_s16 = sshll.u32 %s1272_s29, 4  ;;  %s1210_s16 = int_to_ptr.vmem [resolvable:$false] %s1209_s16 }
  0x1c   : > { %1062 = vmatprep.subr.msk.mxu1 %vm320_vm0, %v1267_v21  ;;  %vm1382_vm4 = vcmp.eq.s32.totalorder %v286_v16, %v1347_v2  ;;  %v250_v25 = vadd.s32 216, %v1342_v1  ;;  %v234_v26 = vadd.s32 88, %v1342_v1  ;;  %v249_v27 = vadd.s32 208, %v1342_v1  ;;  %1027 = vmatprep.subr.msk.mxu0 %vm320_vm0, %v1267_v21  ;;  %v219_v49 = vld [vmem:[%s1753_s9 + $0x8] sm:$0xff]  ;;  %s1211_s30 = scalar_lea.vmem %s1210_s16, 128  ;;  %p1212_p0 = scmp.lt.s32.totalorder %s844_s20, %s1210_s16 }
  0x1d   : > { %1063 = vmatpush3.msk.msra.mxu1 %vm1366_vm1, %v1267_v21  ;;  %v233_v28 = vadd.s32 80, %v1342_v1  ;;  %vm1398_vm5 = vcmp.eq.s32.totalorder %v270_v17, %v1347_v2  ;;  %v248_v30 = vadd.s32 200, %v1342_v1  ;;  %v232_v31 = vadd.s32 72, %v1342_v1  ;;  %1028 = vmatpush3.msk.msra.mxu0 %vm1366_vm1, %v1267_v21 }
  0x1e   : > { %1064 = vmatprep.subr.msk.mxu1 %vm1371_vm2, %v1267_v21  ;;  %v247_v32 = vadd.s32 192, %v1342_v1  ;;  %vm1412_vm6 = vcmp.eq.s32.totalorder %v285_v20, %v1347_v2  ;;  %v284_v34 = vand.u32 31, %v250_v25  ;;  %v268_v35 = vand.u32 31, %v234_v26  ;;  %1029 = vmatprep.subr.msk.mxu0 %vm1371_vm2, %v1267_v21 }
  0x1f   : > { %1065 = vmatpush3.msk.msra.mxu1 %vm1377_vm3, %v1267_v21  ;;  %v283_v36 = vand.u32 31, %v249_v27  ;;  %vm1423_vm7 = vcmp.eq.s32.totalorder %v269_v24, %v1347_v2  ;;  %v267_v38 = vand.u32 31, %v233_v28  ;;  %v231_v39 = vadd.s32 64, %v1342_v1  ;;  %1030 = vmatpush3.msk.msra.mxu0 %vm1377_vm3, %v1267_v21 }
  0x20   : > { %1066 = vmatprep.subr.msk.mxu1 %vm1382_vm4, %v1267_v21  ;;  %vm1435_vm8 = vcmp.eq.s32.totalorder %v284_v34, %v1347_v2  ;;  %v282_v41 = vand.u32 31, %v248_v30  ;;  %vm1443_vm9 = vcmp.eq.s32.totalorder %v268_v35, %v1347_v2  ;;  %v266_v43 = vand.u32 31, %v232_v31  ;;  %1031 = vmatprep.subr.msk.mxu0 %vm1382_vm4, %v1267_v21 }
  0x21   : > { %1067 = vmatpush3.msk.msra.mxu1 %vm1398_vm5, %v1267_v21  ;;  %v281_v44 = vand.u32 31, %v247_v32  ;;  %vm1451_vm10 = vcmp.eq.s32.totalorder %v283_v36, %v1347_v2  ;;  %v246_v46 = vadd.s32 184, %v1342_v1  ;;  %v230_v47 = vadd.s32 56, %v1342_v1  ;;  %1032 = vmatpush3.msk.msra.mxu0 %vm1398_vm5, %v1267_v21 }
  0x22   : > { %1068 = vmatprep.subr.msk.mxu1 %vm1412_vm6, %v1267_v21  ;;  %v245_v48 = vadd.s32 176, %v1342_v1  ;;  %vm1465_vm11 = vcmp.eq.s32.totalorder %v267_v38, %v1347_v2  ;;  %v265_v50 = vand.u32 31, %v231_v39  ;;  %v229_v51 = vadd.s32 48, %v1342_v1  ;;  %1033 = vmatprep.subr.msk.mxu0 %vm1412_vm6, %v1267_v21  ;;  %v210_v39 = vld [vmem:[%s1361_s28] sm:$0xff] }
  0x23   : > { %1069 = vmatpush3.msk.msra.mxu1 %vm1423_vm7, %v1267_v21  ;;  %vm1477_vm12 = vcmp.eq.s32.totalorder %v282_v41, %v1347_v2  ;;  %v280_v53 = vand.u32 31, %v246_v46  ;;  %v244_v54 = vadd.s32 168, %v1342_v1  ;;  %vm1489_vm13 = vcmp.eq.s32.totalorder %v266_v43, %v1347_v2  ;;  %1034 = vmatpush3.msk.msra.mxu0 %vm1423_vm7, %v1267_v21  ;;  %v215_v43 = vld [vmem:[%s1361_s28 + $0x28] sm:$0xff]  ;;  %v216_v46 = vld [vmem:[%s1361_s28 + $0x30] sm:$0x1] }
  0x24   : > { %1070 = vmatprep.subr.msk.mxu1 %vm1435_vm8, %v1267_v21  ;;  %v264_v56 = vand.u32 31, %v230_v47  ;;  %v228_v57 = vadd.s32 40, %v1342_v1  ;;  %vm1501_vm14 = vcmp.eq.s32.totalorder %v281_v44, %v1347_v2  ;;  %v279_v59 = vand.u32 31, %v245_v48  ;;  %1035 = vmatprep.subr.msk.mxu0 %vm1435_vm8, %v1267_v21  ;;  %v214_v44 = vld [vmem:[%s1361_s28 + $0x20] sm:$0xff]  ;;  %v220_v48 = vld [vmem:[%s1753_s9 + $0x10] sm:$0xff]  ;;  %s1205_s28 = scalar_lea.vmem %s844_s20, 64 }
  0x25   : > { %1071 = vmatpush3.msk.msra.mxu1 %vm1443_vm9, %v1267_v21  ;;  %v243_v60 = vadd.s32 160, %v1342_v1  ;;  %vm1510_vm15 = vcmp.eq.s32.totalorder %v265_v50, %v1347_v2  ;;  %v263_v62 = vand.u32 31, %v229_v51  ;;  %v227_v63 = vadd.s32 32, %v1342_v1  ;;  %1036 = vmatpush3.msk.msra.mxu0 %vm1443_vm9, %v1267_v21  ;;  %v218_v50 = vld [vmem:[%s1753_s9] sm:$0xff]  ;;  %p1206_p11 = scmp.ne.s32.totalorder %s844_s20, %s1205_s28  ;;  %p1213_p1 = scmp.lt.s32.totalorder %s1211_s30, %s1205_s28 }
  0x26   : > { %1072 = vmatprep.subr.msk.mxu1 %vm1451_vm10, %v1267_v21  ;;  %vm1519_vm0 = vcmp.eq.s32.totalorder %v280_v53, %v1347_v2  ;;  %v278_v3 = vand.u32 31, %v244_v54  ;;  %v242_v4 = vadd.s32 152, %v1342_v1  ;;  %vm1531_vm1 = vcmp.eq.s32.totalorder %v264_v56, %v1347_v2  ;;  %1037 = vmatprep.subr.msk.mxu0 %vm1451_vm10, %v1267_v21 }
  0x27   : > { %1073 = vmatpush3.msk.msra.mxu1 %vm1465_vm11, %v1267_v21  ;;  %v262_v6 = vand.u32 31, %v228_v57  ;;  %v226_v7 = vadd.s32 24, %v1342_v1  ;;  %vm1543_vm2 = vcmp.eq.s32.totalorder %v279_v59, %v1347_v2  ;;  %v277_v9 = vand.u32 31, %v243_v60  ;;  %1038 = vmatpush3.msk.msra.mxu0 %vm1465_vm11, %v1267_v21  ;;  %p1207_p12 = pnand %p1206_p11, %p1331_p5  ;;  %p1214_p2 = por %p1213_p1, %p1212_p0 }
  0x28   : > { %1074 = vmatprep.subr.msk.mxu1 %vm1477_vm12, %v1267_v21  ;;  %v241_v10 = vadd.s32 144, %v1342_v1  ;;  %vm1555_vm3 = vcmp.eq.s32.totalorder %v263_v62, %v1347_v2  ;;  %v261_v12 = vand.u32 31, %v227_v63  ;;  %v225_v13 = vadd.s32 16, %v1342_v1  ;;  %1039 = vmatprep.subr.msk.mxu0 %vm1477_vm12, %v1267_v21 }
  0x29   : > { %1075 = vmatpush3.msk.msra.mxu1 %vm1489_vm13, %v1267_v21  ;;  %vm1567_vm4 = vcmp.eq.s32.totalorder %v278_v3, %v1347_v2  ;;  %v276_v15 = vand.u32 31, %v242_v4  ;;  %v240_v16 = vadd.s32 136, %v1342_v1  ;;  %vm1576_vm5 = vcmp.eq.s32.totalorder %v262_v6, %v1347_v2  ;;  %1040 = vmatpush3.msk.msra.mxu0 %vm1489_vm13, %v1267_v21  ;;  %p1208_p13 = pneg %p1207_p12 }
  0x2a   : > { %1076 = vmatprep.subr.msk.mxu1 %vm1501_vm14, %v1267_v21  ;;  %v260_v18 = vand.u32 31, %v226_v7  ;;  %v224_v19 = vadd.s32 8, %v1342_v1  ;;  %vm1588_vm6 = vcmp.eq.s32.totalorder %v277_v9, %v1347_v2  ;;  %v275_v22 = vand.u32 31, %v241_v10  ;;  %1041 = vmatprep.subr.msk.mxu0 %vm1501_vm14, %v1267_v21  ;;  %v221_v10 = vld [vmem:[%s1753_s9 + $0x18] sm:$0x1] }
  0x2b   : > { %1077 = vmatpush3.msk.msra.mxu1 %vm1510_vm15, %v1267_v21  ;;  %v239_v23 = vadd.s32 128, %v1342_v1  ;;  %vm1600_vm7 = vcmp.eq.s32.totalorder %v261_v12, %v1347_v2  ;;  %v259_v25 = vand.u32 31, %v225_v13  ;;  %vm1611_vm8 = vcmp.eq.s32.totalorder %v276_v15, %v1347_v2  ;;  %1042 = vmatpush3.msk.msra.mxu0 %vm1510_vm15, %v1267_v21  ;;  %p1215_p3 = pnand %p1214_p2, %p1208_p13 }
  0x2c   : > { %1078 = vmatprep.subr.msk.mxu1 %vm1519_vm0, %v1267_v21  ;;  %v274_v27 = vand.u32 31, %v240_v16  ;;  %vm1623_vm9 = vcmp.eq.s32.totalorder %v260_v18, %v1347_v2  ;;  %v258_v29 = vand.u32 31, %v224_v19  ;;  %1043 = vmatprep.subr.msk.mxu0 %vm1519_vm0, %v1267_v21  ;;  %vm1634_vm10 = vcmp.eq.s32.totalorder %v275_v22, %v1347_v2 }
  0x2d   : > { %1079 = vmatpush3.msk.msra.mxu1 %vm1531_vm1, %v1267_v21  ;;  %v273_v31 = vand.u32 31, %v239_v23  ;;  %1044 = vmatpush3.msk.msra.mxu0 %vm1531_vm1, %v1267_v21  ;;  %vm1645_vm11 = vcmp.eq.s32.totalorder %v259_v25, %v1347_v2  ;;  %v257_v33 = vand.u32 31, %v1342_v1  ;;  %v354_v41 = vcombine.high %v209_v37, %v209_v37 }
  0x2e   : > { %1080 = vmatprep.subr.msk.mxu1 %vm1543_vm2, %v1267_v21  ;;  %1045 = vmatprep.subr.msk.mxu0 %vm1543_vm2, %v1267_v21  ;;  %vm1660_vm12 = vcmp.eq.s32.totalorder %v274_v27, %v1347_v2  ;;  %vm1671_vm13 = vcmp.eq.s32.totalorder %v258_v29, %v1347_v2  ;;  %v1268_v47 = vmov 0.0   ;;  %vm1269_vm0 = vmmov 0  }
  0x2f   : > { %1081 = vmatpush3.msk.msra.mxu1 %vm1555_vm3, %v1267_v21  ;;  %1046 = vmatpush3.msk.msra.mxu0 %vm1555_vm3, %v1267_v21  ;;  %vm1682_vm14 = vcmp.eq.s32.totalorder %v273_v31, %v1347_v2  ;;  %vm1693_vm15 = vcmp.eq.s32.totalorder %v257_v33, %v1347_v2  ;;  %vm512_vm1 = vcmask 257024   ;;  %vm520_vm2 = vcmask 261120  }
  0x30   : > { %1082 = vmatprep.subr.msk.mxu1 %vm1567_vm4, %v1267_v21  ;;  %1047 = vmatprep.subr.msk.mxu0 %vm1567_vm4, %v1267_v21  ;;  %v1271_v11 = vmov 1.0   ;;  %vm730_vm3 = vcmask 39936   ;;  %v693_v29 = vsub.s32 0, %v1342_v1 }
  0x31   : > { %1083 = vmatpush3.msk.msra.mxu1 %vm1576_vm5, %v1267_v21  ;;  %1048 = vmatpush3.msk.msra.mxu0 %vm1576_vm5, %v1267_v21 }
  0x32   : > { %1084 = vmatprep.subr.msk.mxu1 %vm1588_vm6, %v1267_v21  ;;  %1049 = vmatprep.subr.msk.mxu0 %vm1588_vm6, %v1267_v21 }
  0x33   : > { %1085 = vmatpush3.msk.msra.mxu1 %vm1600_vm7, %v1267_v21  ;;  %1050 = vmatpush3.msk.msra.mxu0 %vm1600_vm7, %v1267_v21  ;;  %vm736_vm7 = vcmask 32768  }
  0x34   : > { %1086 = vmatprep.subr.msk.mxu1 %vm1611_vm8, %v1267_v21  ;;  %1051 = vmatprep.subr.msk.mxu0 %vm1611_vm8, %v1267_v21  ;;  %vm749_vm8 = vcmask 1040384  }
  0x35   : > { %1087 = vmatpush3.msk.msra.mxu1 %vm1623_vm9, %v1267_v21  ;;  %1052 = vmatpush3.msk.msra.mxu0 %vm1623_vm9, %v1267_v21 }
  0x36   : > { %1088 = vmatprep.subr.msk.mxu1 %vm1634_vm10, %v1267_v21  ;;  %1053 = vmatprep.subr.msk.mxu0 %vm1634_vm10, %v1267_v21 }
  0x37   : > { %1089 = vmatpush3.msk.msra.mxu1 %vm1645_vm11, %v1267_v21  ;;  %1054 = vmatpush3.msk.msra.mxu0 %vm1645_vm11, %v1267_v21  ;;  %vm745_vm11 = vcmask 203776  }
  0x38   : > { %1090 = vmatprep.subr.msk.mxu1 %vm1660_vm12, %v1267_v21  ;;  %1055 = vmatprep.subr.msk.mxu0 %vm1660_vm12, %v1267_v21 }
  0x39   : > { %1091 = vmatpush3.msk.msra.mxu1 %vm1671_vm13, %v1267_v21  ;;  %420 = vmatprep.mubr.f32.mxu0 %v354_v41 }
  0x3a   : > { %1092 = vmatprep.subr.msk.mxu1 %vm1682_vm14, %v1267_v21  ;;  %1056 = vmatpush3.msk.msra.mxu0 %vm1671_vm13, %v1267_v21  ;;  %vm827_vm13 = vcmask 35840  }
  0x3b   : > { %1093 = vmatpush3.msk.msra.mxu1 %vm1693_vm15, %v1267_v21  ;;  %1057 = vmatprep.subr.msk.mxu0 %vm1682_vm14, %v1267_v21 }
  0x3c   : > { %491 = vmatmul.mubr.f32.vlgmr.msra.gmra.mxu1 %v210_v39  ;;  %1058 = vmatpush3.msk.msra.mxu0 %vm1693_vm15, %v1267_v21  ;;  %v1270_v21 = vmov 0  }
  0x3d   : > { %495 = vmatprep.mubr.f32.mxu1 %v213_v40  ;;  %421 = vmatmul.mubr.f32.vlgmr.msra.gmra.mxu0 %v209_v37 }
  0x3e   : > { %1132 = vmatprep.subr.mxu1 %v1268_v47  ;;  %1121 = vmatprep.subr.mxu0 %v1268_v47 }
  0x3f   : > { %1129 = vmatprep.mubr.msk.f32.mxu0 %vm1269_vm0, %v1268_v47  ;;  %1199 = vset.pattern.permute.xlu1 %v1270_v21 }
  0x40   : > { %496 = vmatmul.mubr.f32.gmra.mxu1 %v212_v42  ;;  %1198 = vset.pattern.permute.xlu0 %v1270_v21 }
  0x41   : > { %500 = vmatprep.mubr.f32.mxu1 %v215_v43  ;;  %713 = vperm.xlu1 %1199, %v220_v48  }
  0x44   : > { %501 = vmatmul.mubr.f32.gmra.mxu1 %v214_v44 }
  0x45   : > { %505 = vmatprep.mubr.f32.mxu1 %v217_v45  ;;  %710 = vperm.xlu1 %1199, %v219_v49  }
  0x48   : > { %506 = vmatmul.mubr.f32.gmra.mxu1 %v216_v46 }
  0x49   : > { %1140 = vmatprep.mubr.msk.f32.mxu1 %vm1269_vm0, %v1268_v47  ;;  %707 = vperm.xlu1 %1199, %v218_v50  }
  0xbc   : > { %v714_v12 = vpop.permute.xlu1 %713 }
  0xbd   : > { %vm720_vm6 = vcmp.eq.s32.totalorder %v714_v12, %v1347_v2 }
  0xbe   : > { %v1013_v20 = vsel %vm720_vm6, 1.0, %v1268_v47 }
  0xbf   : > { %v734_v23 = vsel %vm730_vm3, %v1013_v20, 0.0 }
  0xc0   : > { %v711_v13 = vpop.permute.xlu1 %710 }
  0xc1   : > { %vm719_vm4 = vcmp.eq.s32.totalorder %v711_v13, %v1347_v2 }
  0xc2   : > { %v1012_v15 = vsel %vm719_vm4, 1.0, %v1268_v47 }
  0xc3   : > { %v732_v17 = vsel %vm730_vm3, %v1012_v15, 0.0 }
  0xc4   : > { %v708_v14 = vpop.permute.xlu1 %707 }
  0xc5   : > { %vm718_vm5 = vcmp.eq.s32.totalorder %v708_v14, %v1347_v2 }
  0xc6   : > { %v1011_v16 = vsel %vm718_vm5, 1.0, %v1268_v47 }
  0xc7   : > { %v731_v18 = vsel %vm730_vm3, %v1011_v16, 0.0 }
  0xc8   : > { %v733_v19 = vadd.f32 %v732_v17, %v731_v18 }
  0xca   : > { %v735_v24 = vadd.f32 %v734_v23, %v733_v19 }
  0xfc   : > { %v1094_v51 = vpop.f32.mrf.mxu1 }
  0xfd   : > { %v1059_v55 = vpop.f32.mrf.mxu0 }
  0xfe   : > { %v1095_v52 = vpop.f32.mrf.mxu1 }
  0xff   : > { %v1060_v57 = vpop.f32.mrf.mxu0  ;;  %v1096_v7 = vadd.f32 %v1095_v52, %v1094_v51 }
 0x100   : > { %v1097_v53 = vpop.f32.mrf.mxu1  ;;  %v1061_v58 = vadd.f32 %v1060_v57, %v1059_v55 }
 0x101   : > { %v516_v9 = vmul.f32 %v1096_v7, %v1096_v7 }
 0x102   : > { %v1098_v54 = vpop.f32.mrf.mxu1  ;;  %v511_v60 = vmul.f32 %v1061_v58, %v1061_v58 }
 0x103   : > { %v1099_v5 = vadd.f32 %v1098_v54, %v1097_v53 }
 0x104   : > { %v1100_v56 = vpop.f32.mrf.mxu1  ;;  %v513_v62 = vsel %vm512_vm1, %v511_v60, 0.0 }
 0x105   : > { %514 = vadd.xlane.f32.xlu0 %v513_v62  ;;  %v517_v8 = vmul.f32 %v1099_v5, %v1099_v5 }
 0x106   : > { %v1101_v59 = vpop.f32.mrf.mxu1 }
 0x107   : > { %v1102_v3 = vadd.f32 %v1101_v59, %v1100_v56 }
 0x108   : > { %v1103_v61 = vpop.f32.mrf.mxu1 }
 0x109   : > { %v518_v6 = vmul.f32 %v1102_v3, %v1102_v3 }
 0x10a   : > { %v1104_v63 = vpop.f32.mrf.mxu1 }
 0x10b   : > { %v1105_v0 = vadd.f32 %v1104_v63, %v1103_v61 }
 0x10d   : > { %v519_v4 = vmul.f32 %v1105_v0, %v1105_v0  ;;  %1133 = vmatpush3.xpose.msk.msra.mxu1 %vm520_vm2, %v1105_v0 }
 0x10e   : > { %1134 = vmatprep.subr.mxu1 %v1268_v47 }
 0x10f   : > { %1122 = vmatpush3.xpose.msk.msra.mxu0 %vm520_vm2, %v519_v4 }
 0x110   : > { %1123 = vmatprep.subr.mxu0 %v1268_v47 }
 0x111   : > { %1135 = vmatpush3.xpose.msk.msra.mxu1 %vm520_vm2, %v1102_v3 }
 0x112   : > { %1136 = vmatprep.subr.mxu1 %v1268_v47 }
 0x113   : > { %1124 = vmatpush3.xpose.msk.msra.mxu0 %vm520_vm2, %v518_v6 }
 0x114   : > { %1125 = vmatprep.subr.mxu0 %v1268_v47 }
 0x115   : > { %1137 = vmatpush3.xpose.msk.msra.mxu1 %vm520_vm2, %v1099_v5 }
 0x116   : > { %1138 = vmatprep.subr.mxu1 %v1268_v47 }
 0x117   : > { %1126 = vmatpush3.xpose.msk.msra.mxu0 %vm520_vm2, %v517_v8 }
 0x118   : > { %1127 = vmatprep.subr.mxu0 %v1268_v47 }
 0x119   : > { %1139 = vmatpush3.xpose.msk.msra.mxu1 %vm520_vm2, %v1096_v7 }
 0x11b   : > { %1128 = vmatpush3.xpose.msk.msra.mxu0 %vm520_vm2, %v516_v9  ;;  %716 = vperm.xlu0 %1198, %v221_v10  }
 0x11c   : > { %1141 = vmatmul.mubr.msk.f32.vlgmr.msra.gmra.mxu1 %vm520_vm2, %v1061_v58  ;;  %1143 = vmatprep.subr.mxu0 %v1268_v47 }
 0x11e   : > { %1130 = vmatmul.mubr.msk.f32.vlgmr.msra.gmra.mxu0 %vm520_vm2, %v1271_v11 }
 0x11f   : > { %1151 = vmatprep.mubr.msk.f32.mxu0 %vm1269_vm0, %v1268_v47 }
 0x18e   : > { %v515_v22 = vpop.xlane.xlu0 %514 }
 0x196   : > { %v717_v25 = vpop.permute.xlu0 %716 }
 0x197   : > { %vm721_vm9 = vcmp.eq.s32.totalorder %v717_v25, %v1347_v2 }
 0x198   : > { %v1014_v26 = vsel %vm721_vm9, 1.0, %v1268_v47 }
 0x199   : > { %v737_v27 = vsel %vm736_vm7, %v1014_v26, 0.0  ;;  %1144 = vmatpush3.msk.msra.mxu0 %vm749_vm8, %v1014_v26 }
 0x19a   : > { %v738_v28 = vadd.f32 %v737_v27, %v735_v24  ;;  %1145 = vmatprep.subr.mxu0 %v1268_v47 }
 0x19b   : > { %1146 = vmatpush3.msk.msra.mxu0 %vm720_vm6, %v1271_v11 }
 0x19c   : > { %1147 = vmatprep.subr.mxu0 %v1268_v47  ;;  %v739_v42 = vrot.slane %v738_v28, 4 }
 0x19d   : > { %1148 = vmatpush3.msk.msra.mxu0 %vm719_vm4, %v1271_v11 }
 0x19e   : > { %1149 = vmatprep.subr.mxu0 %v1268_v47  ;;  %v740_v43 = vadd.f32 %v739_v42, %v738_v28 }
 0x19f   : > { %1150 = vmatpush3.msk.msra.mxu0 %vm718_vm5, %v1271_v11 }
 0x1a0   : > { %v741_v44 = vrot.slane %v740_v43, 2 }
 0x1a2   : > { %v742_v45 = vadd.f32 %v741_v44, %v740_v43 }
 0x1a4   : > { %v743_v46 = vrot.slane %v742_v45, 1 }
 0x1a6   : > { %v744_v47 = vadd.f32 %v743_v46, %v742_v45 }
 0x1a8   : > { %v823_v21 = vmax.f32 %v744_v47, 1.0 }
 0x1dc   : > { %v687_v30 = vpop.f32.mrf.mxu1 }
 0x1dd   : > { %v696_v35 = vmul.f32 2.0, %v687_v30 }
 0x1de   : > { %v602_v31 = vpop.f32.mrf.mxu0  ;;  %v1142_v32 = vpop.f32.mrf.mxu1 }
 0x1df   : > { %v694_v33 = vrot.slane %v602_v31, %v693_v29 }
 0x1e0   : > { %v1131_v34 = vpop.f32.mrf.mxu0 }
 0x1e1   : > { %v695_v36 = vadd.f32 %v694_v33, %v515_v22 }
 0x1e3   : > { %v697_v37 = vsub.f32 %v695_v36, %v696_v35 }
 0x1e5   : > { %v698_v38 = vmax.f32 %v697_v37, 0.0 }
 0x1e7   : > { %1201 = vrsqrt.f32 %v698_v38  ;;  %vm701_vm10 = vcmp.eq.f32.partialorder %v698_v38, inf  ;;  %v704_v41 = vand.u32 2147483648, %v698_v38  ;;  %vm703_vm12 = vcmp.eq.f32.partialorder %v698_v38, 0.0 }
 0x1e8   : > { %1203 = vrcp.f32 %v823_v21 }
 0x1f4   : > { %v1202_v39 = vpop.eup %1201 }
 0x1f5   : > { %v700_v40 = vmul.f32 %v1202_v39, %v698_v38  ;;  %v1204_v48 = vpop.eup %1203 }
 0x1f7   : > { %v702_v2 = vsel %vm701_vm10, %v698_v38, %v700_v40 }
 0x1f8   : > { %v705_v1 = vsel %vm703_vm12, %v704_v41, %v702_v2 }
 0x1f9   : > { %1152 = vmatmul.mubr.msk.f32.vlgmr.msra.gmra.mxu0 %vm745_vm11, %v705_v1 }
 0x2b9   : > { %v819_v49 = vpop.f32.mrf.mxu0 }
 0x2ba   : > { %v825_v50 = vmul.f32 %v1204_v48, %v819_v49 }
 0x2bb   : > { %v1153_v51 = vpop.f32.mrf.mxu0 }
 0x2bc   : > { %v826_v52 = vsub.f32 0.0, %v825_v50 }
 0x2be   : > { %828 = vst.msk [vmem:[%s193_s19] sm:$0xf] %vm827_vm13, %v826_v52 }
 0x2bf   : > { %1218 = shalt.err (!%p1215_p3)
}
 0x2c0   : > { %s1219_s4 = scalar_lea.hbm %s841_s26, 64  ;;  %s1223_s7 = scalar_lea.hbm %s1835_s3, 256 }
 0x2c1   : > { %p1220_p4 = scmp.ne.s32.totalorder %s841_s26, %s1219_s4  ;;  %p1224_p9 = scmp.lt.s32.totalorder %s841_s26, %s1835_s3 }
 0x2c2   : > { %p1225_p10 = scmp.lt.s32.totalorder %s1223_s7, %s1219_s4 }
 0x2c3   : > { %p1221_p7 = pnand %p1220_p4, %p1331_p5 }
 0x2c4   : > { %p1226_p11 = por %p1225_p10, %p1224_p9 }
 0x2c5   : > { %p1222_p8 = pneg %p1221_p7 }
 0x2c7   : > { %p1227_p12 = pnand %p1226_p11, %p1222_p8 }
 0x2c9   : > { %1230 = shalt.err (!%p1227_p12)
}
 0x2ca   : > { %1154 = dma.vmem_to_hbm [thread:$0]  (%p1331_p5), %s844_s20, 64, %s841_s26, %s830_s27  }
 0x2cb PF: > { %p1160_p13 = scmp.ge.s32.totalorder %s1265_s15, 2  ;;  %s855_s10 = sand.u32 1, %s1253_s12  }
 0x2cc   : > { %s856_s11 = scalar_lea.sflag [#allocation3], %s855_s10 }
 0x2cd   : > { %p1157_p0 = pnand %p1160_p13, %p1335_p6 }
 0x2cf   : > { %p1158_p1 = pneg %p1157_p0 }
 0x2d1   : > { %1248 = dma.done.wait (%p1158_p1), %s856_s11, 64  }
 0x2d2   : > { %1250 = vsyncadd (%p1158_p1), %s856_s11, 4294967232  ;;  %p13_p2 = scmp.ge.s32.totalorder %s1318_s18, 6   ;;  %s1900_s12 = smov %s1257_s13 }
 0x2d3   : > { %s1901_s13 = smov %s1261_s14  ;;  %s1902_s14 = smov %s1329_s21 }
 0x2d4   : > { %s1903_s15 = smov %s1318_s18  ;;  %15 = sbr.rel (!%p13_p2) target bundleno = 3 (0x3), region = 73 }
 0x2d9   :  { %861 = vsyncpa [#allocation3], 1 }
 0x2da   :  { %863 = vsyncpa [#allocation3 + $0x1], 1 }

</bundles_post_ra>
